<compile_context>
chip_gen: v7x
topology: tpu7x:2x2x1
jax: 0.10.0
libtpu: 0.0.40
codegen_flags: <defaults>
</compile_context>

<pallas_src>
import jax
import jax.numpy as jnp
from jax.experimental import pallas as pl
from jax.experimental.pallas import tpu as pltpu


def _round_up(x, m):
    return (x + m - 1) // m * m


def dan_mlp_kernel(summed_ref, inv_len_ref,
                   w1_ref, b1_ref, w2_ref, b2_ref,
                   w3_ref, b3_ref, w4_ref, b4_ref,
                   out_ref):
    """(TB, E_pad) summed-embedding tile -> (TB, C_pad) fp32 logits tile."""
    # Length normalization fused here (elementwise multiply rides in VPU slack).
    x = (summed_ref[...] * inv_len_ref[...]).astype(jnp.bfloat16)
    h = jnp.dot(x, w1_ref[...], preferred_element_type=jnp.float32) + b1_ref[...]
    h = jnp.maximum(h, 0.0).astype(jnp.bfloat16)
    h = jnp.dot(h, w2_ref[...], preferred_element_type=jnp.float32) + b2_ref[...]
    h = jnp.maximum(h, 0.0).astype(jnp.bfloat16)
    h = jnp.dot(h, w3_ref[...], preferred_element_type=jnp.float32) + b3_ref[...]
    h = jnp.maximum(h, 0.0).astype(jnp.bfloat16)
    out_ref[...] = (jnp.dot(h, w4_ref[...], preferred_element_type=jnp.float32)
                    + b4_ref[...])


def prepare_params(params):
    """One-time weight prep: pad to lane-dense multiples of 128 and cast to bf16."""
    emb = params["embedding"].astype(jnp.float32)
    E = emb.shape[1]
    H = params["w1"].shape[1]
    C = params["w4"].shape[1]
    E_pad = _round_up(E, 128)
    H_pad = _round_up(H, 128)
    C_pad = _round_up(max(C, 128), 128)      # unmasked, lane-dense output store

    def pad2(a, rows, cols, dtype):
        a = jnp.pad(a, ((0, rows - a.shape[0]), (0, cols - a.shape[1])))
        return a.astype(dtype)

    return {
        "embedding": emb,
        "dims": (E, H, C, E_pad, H_pad, C_pad),
        # MXU operands in bf16 (native on v5e/v6e/v7x); biases stay fp32 and
        # are added to the fp32 accumulator inside the kernel.
        "w1": pad2(params["w1"], E_pad, H_pad, jnp.bfloat16),
        "w2": pad2(params["w2"], H_pad, H_pad, jnp.bfloat16),
        "w3": pad2(params["w3"], H_pad, H_pad, jnp.bfloat16),
        "w4": pad2(params["w4"], H_pad, C_pad, jnp.bfloat16),
        "b1": pad2(params["b1"], 1, H_pad, jnp.float32),
        "b2": pad2(params["b2"], 1, H_pad, jnp.float32),
        "b3": pad2(params["b3"], 1, H_pad, jnp.float32),
        "b4": pad2(params["b4"], 1, C_pad, jnp.float32),
    }


def _choose_batch_tile(B, batch_tile):
    """Tile rows so the grid has >=2 parallel steps (v7x megacore) with <8 rows
    of batch padding and <= batch_tile rows per step (vreg/VMEM pressure)."""
    B8 = _round_up(B, 8)
    if B8 <= 8:
        return B8, B8
    n_steps = max(2, pl.cdiv(B8, batch_tile))
    tb = _round_up(pl.cdiv(B8, n_steps), 8)
    return tb, tb * n_steps


def _vmem_limit_bytes(tb, E_pad, H_pad, C_pad):
    """Shape-derived VMEM budget, capped below v7x's 64 MiB physical VMEM."""
    bf16, f32 = 2, 4
    streamed = 2 * (tb * E_pad * bf16 + tb * 1 * f32 + tb * C_pad * f32)
    weights = 2 * (E_pad * H_pad + 2 * H_pad * H_pad + H_pad * C_pad) * bf16
    biases = 2 * (3 * H_pad + C_pad) * f32
    acts = 3 * tb * H_pad * f32
    est = int(1.25 * (streamed + weights + biases + acts)) + (2 << 20)
    return max(16 << 20, min(est, 48 << 20))


def dan_forward(text, length, prepped, *, batch_tile=256):
    """text: (S, B) int32, length: (B,) int32, prepped: prepare_params(...) -> (B, C) logits."""
    emb = prepped["embedding"]
    E, H, C, E_pad, H_pad, C_pad = prepped["dims"]

    # Embedding gather + sequence sum stay in XLA (fused gather+reduce); the
    # kernel never sees the S-times redundant (S, B, E) tensor.
    # TODO(synk): if HLO ever shows the (S, B, E) intermediate materializing
    # for large S, switch to a segment-sum / one-hot-matmul formulation.
    summed = jnp.take(emb, text, axis=0).sum(axis=0)                 # (B, E) f32
    inv_len = 1.0 / (length.astype(jnp.float32) + 1.0)               # (B,)

    B = summed.shape[0]
    tb, b_pad = _choose_batch_tile(B, batch_tile)

    summed_p = jnp.pad(summed.astype(jnp.bfloat16),
                       ((0, b_pad - B), (0, E_pad - E)))             # (b_pad, E_pad) bf16
    inv_len_p = jnp.pad(inv_len, (0, b_pad - B))[:, None]            # (b_pad, 1)   f32

    grid = (b_pad // tb,)
    vmem_bytes = _vmem_limit_bytes(tb, E_pad, H_pad, C_pad)

    def build(weight_mode):
        def wspec(shape):
            # Constant index_map: weights/biases stay resident in VMEM across
            # grid steps; weight_mode optionally single-buffers them.
            return pl.BlockSpec(shape, lambda i: (0, 0), pipeline_mode=weight_mode)

        return pl.pallas_call(
            dan_mlp_kernel,
            out_shape=jax.ShapeDtypeStruct((b_pad, C_pad), jnp.float32),
            grid=grid,
            in_specs=[
                pl.BlockSpec((tb, E_pad), lambda i: (i, 0)),         # summed tile
                pl.BlockSpec((tb, 1), lambda i: (i, 0)),             # inv_len tile
                wspec(prepped["w1"].shape), wspec(prepped["b1"].shape),
                wspec(prepped["w2"].shape), wspec(prepped["b2"].shape),
                wspec(prepped["w3"].shape), wspec(prepped["b3"].shape),
                wspec(prepped["w4"].shape), wspec(prepped["b4"].shape),
            ],
            out_specs=pl.BlockSpec((tb, C_pad), lambda i: (i, 0)),
            compiler_params=pltpu.CompilerParams(
                dimension_semantics=("parallel",),   # shards grid over 2 TCs on v7x
                vmem_limit_bytes=vmem_bytes,
            ),
        )

    args = (summed_p, inv_len_p,
            prepped["w1"], prepped["b1"], prepped["w2"], prepped["b2"],
            prepped["w3"], prepped["b3"], prepped["w4"], prepped["b4"])

    # Single-buffer the resident weights; fall back to default double
    # buffering if this JAX build rejects Buffered(1) for pallas_call specs.
    try:
        out = build(pl.Buffered(1))(*args)
    except Exception:  # pragma: no cover - depends on JAX build
        out = build(None)(*args)

    return out[:B, :C]


def init_params(key, vocab_size, embedding_dim, hidden_dim, n_classes):
    """Deterministic init matching the module's parameter shapes.

    Linear weights stored as (in_features, out_features) so the kernel does x @ W.
    """
    ks = jax.random.split(key, 9)

    def linear(kw, kb, fan_in, fan_out):
        bound = 1.0 / jnp.sqrt(fan_in)
        w = jax.random.uniform(kw, (fan_in, fan_out), jnp.float32, -bound, bound)
        b = jax.random.uniform(kb, (1, fan_out), jnp.float32, -bound, bound)
        return w, b

    params = {}
    params["embedding"] = jax.random.normal(ks[0], (vocab_size, embedding_dim),
                                            jnp.float32)
    params["w1"], params["b1"] = linear(ks[1], ks[2], embedding_dim, hidden_dim)
    params["w2"], params["b2"] = linear(ks[3], ks[4], hidden_dim, hidden_dim)
    params["w3"], params["b3"] = linear(ks[5], ks[6], hidden_dim, hidden_dim)
    params["w4"], params["b4"] = linear(ks[7], ks[8], hidden_dim, n_classes)
    return params


def dan_reference(text, length, params):
    """Pure-JAX fp32 reference (matches the PyTorch module, probs=False)."""
    emb = jnp.take(params["embedding"], text, axis=0)
    mean = emb.sum(0) / (length.astype(jnp.float32)[:, None] + 1.0)
    h = jnp.maximum(mean @ params["w1"] + params["b1"], 0.0)
    h = jnp.maximum(h @ params["w2"] + params["b2"], 0.0)
    h = jnp.maximum(h @ params["w3"] + params["b3"], 0.0)
    return h @ params["w4"] + params["b4"]


if __name__ == "__main__":
    # Small shapes consistent with the module.
    VOCAB, EMBED_DIM, HIDDEN, N_CLASSES = 50, 32, 32, 8
    SEQ, BATCH = 8, 8

    key = jax.random.PRNGKey(0)
    k_params, k_text, k_len = jax.random.split(key, 3)

    params = init_params(k_params, VOCAB, EMBED_DIM, HIDDEN, N_CLASSES)
    prepped = prepare_params(params)

    text = jax.random.randint(k_text, (SEQ, BATCH), 0, VOCAB, dtype=jnp.int32)
    length = jax.random.randint(k_len, (BATCH,), 1, SEQ + 1, dtype=jnp.int32)

    logits = dan_forward(text, length, prepped)
    logits = jax.block_until_ready(logits)

    ref = dan_reference(text, length, params)
    assert logits.shape == (BATCH, N_CLASSES)
    # bf16 MXU operands (fp32 accumulation) -> relaxed tolerance vs fp32 ref.
    assert jnp.allclose(logits, ref, atol=3e-2, rtol=3e-2), (
        float(jnp.max(jnp.abs(logits - ref))))

    print("KERNEL_OK")
</pallas_src>

<mosaic_0001>
module attributes {stable_mosaic.version = 11 : i64} {
  func.func @dan_mlp_kernel(%arg0: i32, %arg1: memref<8x128xbf16, #tpu.memory_space<vmem>>, %arg2: memref<8x1xf32, #tpu.memory_space<vmem>>, %arg3: memref<128x128xbf16, #tpu.memory_space<vmem>>, %arg4: memref<1x128xf32, #tpu.memory_space<vmem>>, %arg5: memref<128x128xbf16, #tpu.memory_space<vmem>>, %arg6: memref<1x128xf32, #tpu.memory_space<vmem>>, %arg7: memref<128x128xbf16, #tpu.memory_space<vmem>>, %arg8: memref<1x128xf32, #tpu.memory_space<vmem>>, %arg9: memref<128x128xbf16, #tpu.memory_space<vmem>>, %arg10: memref<1x128xf32, #tpu.memory_space<vmem>>, %arg11: memref<8x128xf32, #tpu.memory_space<vmem>>) attributes {dimension_semantics = [#tpu.dimension_semantics<parallel>], iteration_bounds = array<i64: 1>, scalar_prefetch = 0 : i64, scratch_operands = 0 : i64, tpu.core_type = #tpu.core_type<tc>, window_params = [{transform_indices = @transform_0, window_bounds = array<i64: 8, 128>}, {transform_indices = @transform_1, window_bounds = array<i64: 8, 1>}, {pipeline_mode = #tpu.pipeline_mode<synchronous>, transform_indices = @transform_2, window_bounds = array<i64: 128, 128>}, {pipeline_mode = #tpu.pipeline_mode<synchronous>, transform_indices = @transform_3, window_bounds = array<i64: 1, 128>}, {pipeline_mode = #tpu.pipeline_mode<synchronous>, transform_indices = @transform_4, window_bounds = array<i64: 128, 128>}, {pipeline_mode = #tpu.pipeline_mode<synchronous>, transform_indices = @transform_5, window_bounds = array<i64: 1, 128>}, {pipeline_mode = #tpu.pipeline_mode<synchronous>, transform_indices = @transform_6, window_bounds = array<i64: 128, 128>}, {pipeline_mode = #tpu.pipeline_mode<synchronous>, transform_indices = @transform_7, window_bounds = array<i64: 1, 128>}, {pipeline_mode = #tpu.pipeline_mode<synchronous>, transform_indices = @transform_8, window_bounds = array<i64: 128, 128>}, {pipeline_mode = #tpu.pipeline_mode<synchronous>, transform_indices = @transform_9, window_bounds = array<i64: 1, 128>}, {transform_indices = @transform_10, window_bounds = array<i64: 8, 128>}]} {
    %c0 = arith.constant 0 : index
    %c0_0 = arith.constant 0 : index
    %0 = vector.load %arg1[%c0, %c0_0] : memref<8x128xbf16, #tpu.memory_space<vmem>>, vector<8x128xbf16>
    %c0_1 = arith.constant 0 : index
    %c0_2 = arith.constant 0 : index
    %1 = vector.load %arg2[%c0_1, %c0_2] : memref<8x1xf32, #tpu.memory_space<vmem>>, vector<8x1xf32>
    %2 = arith.extf %0 : vector<8x128xbf16> to vector<8x128xf32>
    %3 = vector.broadcast %1 : vector<8x1xf32> to vector<8x128xf32>
    %4 = arith.mulf %2, %3 : vector<8x128xf32>
    %5 = arith.truncf %4 : vector<8x128xf32> to vector<8x128xbf16>
    %c0_3 = arith.constant 0 : index
    %c0_4 = arith.constant 0 : index
    %6 = vector.load %arg3[%c0_3, %c0_4] : memref<128x128xbf16, #tpu.memory_space<vmem>>, vector<128x128xbf16>
    %cst = arith.constant dense<0.000000e+00> : vector<8x128xf32>
    %7 = tpu.matmul %5, %6, %cst {dimension_numbers = #tpu.dot_dimension_numbers<[1], [0], [0], [1], [0, 0, 1, 1], [], []>} : vector<8x128xbf16>, vector<128x128xbf16>, vector<8x128xf32> -> vector<8x128xf32>
    %c0_5 = arith.constant 0 : index
    %c0_6 = arith.constant 0 : index
    %8 = vector.load %arg4[%c0_5, %c0_6] : memref<1x128xf32, #tpu.memory_space<vmem>>, vector<1x128xf32>
    %9 = vector.broadcast %8 : vector<1x128xf32> to vector<8x128xf32>
    %10 = arith.addf %7, %9 : vector<8x128xf32>
    %cst_7 = arith.constant 0.000000e+00 : f32
    %11 = vector.broadcast %cst_7 : f32 to vector<8x128xf32>
    %12 = arith.maximumf %10, %11 : vector<8x128xf32>
    %13 = arith.truncf %12 : vector<8x128xf32> to vector<8x128xbf16>
    %c0_8 = arith.constant 0 : index
    %c0_9 = arith.constant 0 : index
    %14 = vector.load %arg5[%c0_8, %c0_9] : memref<128x128xbf16, #tpu.memory_space<vmem>>, vector<128x128xbf16>
    %cst_10 = arith.constant dense<0.000000e+00> : vector<8x128xf32>
    %15 = tpu.matmul %13, %14, %cst_10 {dimension_numbers = #tpu.dot_dimension_numbers<[1], [0], [0], [1], [0, 0, 1, 1], [], []>} : vector<8x128xbf16>, vector<128x128xbf16>, vector<8x128xf32> -> vector<8x128xf32>
    %c0_11 = arith.constant 0 : index
    %c0_12 = arith.constant 0 : index
    %16 = vector.load %arg6[%c0_11, %c0_12] : memref<1x128xf32, #tpu.memory_space<vmem>>, vector<1x128xf32>
    %17 = vector.broadcast %16 : vector<1x128xf32> to vector<8x128xf32>
    %18 = arith.addf %15, %17 : vector<8x128xf32>
    %cst_13 = arith.constant 0.000000e+00 : f32
    %19 = vector.broadcast %cst_13 : f32 to vector<8x128xf32>
    %20 = arith.maximumf %18, %19 : vector<8x128xf32>
    %21 = arith.truncf %20 : vector<8x128xf32> to vector<8x128xbf16>
    %c0_14 = arith.constant 0 : index
    %c0_15 = arith.constant 0 : index
    %22 = vector.load %arg7[%c0_14, %c0_15] : memref<128x128xbf16, #tpu.memory_space<vmem>>, vector<128x128xbf16>
    %cst_16 = arith.constant dense<0.000000e+00> : vector<8x128xf32>
    %23 = tpu.matmul %21, %22, %cst_16 {dimension_numbers = #tpu.dot_dimension_numbers<[1], [0], [0], [1], [0, 0, 1, 1], [], []>} : vector<8x128xbf16>, vector<128x128xbf16>, vector<8x128xf32> -> vector<8x128xf32>
    %c0_17 = arith.constant 0 : index
    %c0_18 = arith.constant 0 : index
    %24 = vector.load %arg8[%c0_17, %c0_18] : memref<1x128xf32, #tpu.memory_space<vmem>>, vector<1x128xf32>
    %25 = vector.broadcast %24 : vector<1x128xf32> to vector<8x128xf32>
    %26 = arith.addf %23, %25 : vector<8x128xf32>
    %cst_19 = arith.constant 0.000000e+00 : f32
    %27 = vector.broadcast %cst_19 : f32 to vector<8x128xf32>
    %28 = arith.maximumf %26, %27 : vector<8x128xf32>
    %29 = arith.truncf %28 : vector<8x128xf32> to vector<8x128xbf16>
    %c0_20 = arith.constant 0 : index
    %c0_21 = arith.constant 0 : index
    %30 = vector.load %arg9[%c0_20, %c0_21] : memref<128x128xbf16, #tpu.memory_space<vmem>>, vector<128x128xbf16>
    %cst_22 = arith.constant dense<0.000000e+00> : vector<8x128xf32>
    %31 = tpu.matmul %29, %30, %cst_22 {dimension_numbers = #tpu.dot_dimension_numbers<[1], [0], [0], [1], [0, 0, 1, 1], [], []>} : vector<8x128xbf16>, vector<128x128xbf16>, vector<8x128xf32> -> vector<8x128xf32>
    %c0_23 = arith.constant 0 : index
    %c0_24 = arith.constant 0 : index
    %32 = vector.load %arg10[%c0_23, %c0_24] : memref<1x128xf32, #tpu.memory_space<vmem>>, vector<1x128xf32>
    %33 = vector.broadcast %32 : vector<1x128xf32> to vector<8x128xf32>
    %34 = arith.addf %31, %33 : vector<8x128xf32>
    %c0_25 = arith.constant 0 : index
    %c0_26 = arith.constant 0 : index
    %35 = vector.load %arg11[%c0_25, %c0_26] : memref<8x128xf32, #tpu.memory_space<vmem>>, vector<8x128xf32>
    tpu.vector_store %arg11[%c0_25, %c0_26], %34 {strides = array<i32>} : memref<8x128xf32, #tpu.memory_space<vmem>>, vector<8x128xf32>,
    return
  }
  func.func @transform_0(%arg0: i32) -> (i32, i32) {
    %c0_i32 = arith.constant 0 : i32
    %c0_i32_0 = arith.constant 0 : i32
    return %arg0, %c0_i32 : i32, i32
  }
  func.func @transform_1(%arg0: i32) -> (i32, i32) {
    %c0_i32 = arith.constant 0 : i32
    %c0_i32_0 = arith.constant 0 : i32
    return %arg0, %c0_i32 : i32, i32
  }
  func.func @transform_2(%arg0: i32) -> (i32, i32) {
    %c0_i32 = arith.constant 0 : i32
    %c0_i32_0 = arith.constant 0 : i32
    %c0_i32_1 = arith.constant 0 : i32
    return %c0_i32, %c0_i32_0 : i32, i32
  }
  func.func @transform_3(%arg0: i32) -> (i32, i32) {
    %c0_i32 = arith.constant 0 : i32
    %c0_i32_0 = arith.constant 0 : i32
    %c0_i32_1 = arith.constant 0 : i32
    return %c0_i32, %c0_i32_0 : i32, i32
  }
  func.func @transform_4(%arg0: i32) -> (i32, i32) {
    %c0_i32 = arith.constant 0 : i32
    %c0_i32_0 = arith.constant 0 : i32
    %c0_i32_1 = arith.constant 0 : i32
    return %c0_i32, %c0_i32_0 : i32, i32
  }
  func.func @transform_5(%arg0: i32) -> (i32, i32) {
    %c0_i32 = arith.constant 0 : i32
    %c0_i32_0 = arith.constant 0 : i32
    %c0_i32_1 = arith.constant 0 : i32
    return %c0_i32, %c0_i32_0 : i32, i32
  }
  func.func @transform_6(%arg0: i32) -> (i32, i32) {
    %c0_i32 = arith.constant 0 : i32
    %c0_i32_0 = arith.constant 0 : i32
    %c0_i32_1 = arith.constant 0 : i32
    return %c0_i32, %c0_i32_0 : i32, i32
  }
  func.func @transform_7(%arg0: i32) -> (i32, i32) {
    %c0_i32 = arith.constant 0 : i32
    %c0_i32_0 = arith.constant 0 : i32
    %c0_i32_1 = arith.constant 0 : i32
    return %c0_i32, %c0_i32_0 : i32, i32
  }
  func.func @transform_8(%arg0: i32) -> (i32, i32) {
    %c0_i32 = arith.constant 0 : i32
    %c0_i32_0 = arith.constant 0 : i32
    %c0_i32_1 = arith.constant 0 : i32
    return %c0_i32, %c0_i32_0 : i32, i32
  }
  func.func @transform_9(%arg0: i32) -> (i32, i32) {
    %c0_i32 = arith.constant 0 : i32
    %c0_i32_0 = arith.constant 0 : i32
    %c0_i32_1 = arith.constant 0 : i32
    return %c0_i32, %c0_i32_0 : i32, i32
  }
  func.func @transform_10(%arg0: i32) -> (i32, i32) {
    %c0_i32 = arith.constant 0 : i32
    %c0_i32_0 = arith.constant 0 : i32
    return %arg0, %c0_i32 : i32, i32
  }
}

module attributes {stable_mosaic.version = 11 : i64} {
  func.func @dan_mlp_kernel(%arg0: i32, %arg1: memref<8x128xbf16, #tpu.memory_space<vmem>>, %arg2: memref<8x1xf32, #tpu.memory_space<vmem>>, %arg3: memref<128x128xbf16, #tpu.memory_space<vmem>>, %arg4: memref<1x128xf32, #tpu.memory_space<vmem>>, %arg5: memref<128x128xbf16, #tpu.memory_space<vmem>>, %arg6: memref<1x128xf32, #tpu.memory_space<vmem>>, %arg7: memref<128x128xbf16, #tpu.memory_space<vmem>>, %arg8: memref<1x128xf32, #tpu.memory_space<vmem>>, %arg9: memref<128x128xbf16, #tpu.memory_space<vmem>>, %arg10: memref<1x128xf32, #tpu.memory_space<vmem>>, %arg11: memref<8x128xf32, #tpu.memory_space<vmem>>) attributes {dimension_semantics = [#tpu.dimension_semantics<parallel>], iteration_bounds = array<i64: 1>, scalar_prefetch = 0 : i64, scratch_operands = 0 : i64, tpu.core_type = #tpu.core_type<tc>, window_params = [{transform_indices = @transform_0, window_bounds = array<i64: 8, 128>}, {transform_indices = @transform_1, window_bounds = array<i64: 8, 1>}, {pipeline_mode = #tpu.pipeline_mode<synchronous>, transform_indices = @transform_2, window_bounds = array<i64: 128, 128>}, {pipeline_mode = #tpu.pipeline_mode<synchronous>, transform_indices = @transform_3, window_bounds = array<i64: 1, 128>}, {pipeline_mode = #tpu.pipeline_mode<synchronous>, transform_indices = @transform_4, window_bounds = array<i64: 128, 128>}, {pipeline_mode = #tpu.pipeline_mode<synchronous>, transform_indices = @transform_5, window_bounds = array<i64: 1, 128>}, {pipeline_mode = #tpu.pipeline_mode<synchronous>, transform_indices = @transform_6, window_bounds = array<i64: 128, 128>}, {pipeline_mode = #tpu.pipeline_mode<synchronous>, transform_indices = @transform_7, window_bounds = array<i64: 1, 128>}, {pipeline_mode = #tpu.pipeline_mode<synchronous>, transform_indices = @transform_8, window_bounds = array<i64: 128, 128>}, {pipeline_mode = #tpu.pipeline_mode<synchronous>, transform_indices = @transform_9, window_bounds = array<i64: 1, 128>}, {transform_indices = @transform_10, window_bounds = array<i64: 8, 128>}]} {
    %c0 = arith.constant 0 : index
    %c0_0 = arith.constant 0 : index
    %0 = vector.load %arg1[%c0, %c0_0] : memref<8x128xbf16, #tpu.memory_space<vmem>>, vector<8x128xbf16>
    %c0_1 = arith.constant 0 : index
    %c0_2 = arith.constant 0 : index
    %1 = vector.load %arg2[%c0_1, %c0_2] : memref<8x1xf32, #tpu.memory_space<vmem>>, vector<8x1xf32>
    %2 = arith.extf %0 : vector<8x128xbf16> to vector<8x128xf32>
    %3 = vector.broadcast %1 : vector<8x1xf32> to vector<8x128xf32>
    %4 = arith.mulf %2, %3 : vector<8x128xf32>
    %5 = arith.truncf %4 : vector<8x128xf32> to vector<8x128xbf16>
    %c0_3 = arith.constant 0 : index
    %c0_4 = arith.constant 0 : index
    %6 = vector.load %arg3[%c0_3, %c0_4] : memref<128x128xbf16, #tpu.memory_space<vmem>>, vector<128x128xbf16>
    %cst = arith.constant dense<0.000000e+00> : vector<8x128xf32>
    %7 = tpu.matmul %5, %6, %cst {dimension_numbers = #tpu.dot_dimension_numbers<[1], [0], [0], [1], [0, 0, 1, 1], [], []>} : vector<8x128xbf16>, vector<128x128xbf16>, vector<8x128xf32> -> vector<8x128xf32>
    %c0_5 = arith.constant 0 : index
    %c0_6 = arith.constant 0 : index
    %8 = vector.load %arg4[%c0_5, %c0_6] : memref<1x128xf32, #tpu.memory_space<vmem>>, vector<1x128xf32>
    %9 = vector.broadcast %8 : vector<1x128xf32> to vector<8x128xf32>
    %10 = arith.addf %7, %9 : vector<8x128xf32>
    %cst_7 = arith.constant 0.000000e+00 : f32
    %11 = vector.broadcast %cst_7 : f32 to vector<8x128xf32>
    %12 = arith.maximumf %10, %11 : vector<8x128xf32>
    %13 = arith.truncf %12 : vector<8x128xf32> to vector<8x128xbf16>
    %c0_8 = arith.constant 0 : index
    %c0_9 = arith.constant 0 : index
    %14 = vector.load %arg5[%c0_8, %c0_9] : memref<128x128xbf16, #tpu.memory_space<vmem>>, vector<128x128xbf16>
    %cst_10 = arith.constant dense<0.000000e+00> : vector<8x128xf32>
    %15 = tpu.matmul %13, %14, %cst_10 {dimension_numbers = #tpu.dot_dimension_numbers<[1], [0], [0], [1], [0, 0, 1, 1], [], []>} : vector<8x128xbf16>, vector<128x128xbf16>, vector<8x128xf32> -> vector<8x128xf32>
    %c0_11 = arith.constant 0 : index
    %c0_12 = arith.constant 0 : index
    %16 = vector.load %arg6[%c0_11, %c0_12] : memref<1x128xf32, #tpu.memory_space<vmem>>, vector<1x128xf32>
    %17 = vector.broadcast %16 : vector<1x128xf32> to vector<8x128xf32>
    %18 = arith.addf %15, %17 : vector<8x128xf32>
    %cst_13 = arith.constant 0.000000e+00 : f32
    %19 = vector.broadcast %cst_13 : f32 to vector<8x128xf32>
    %20 = arith.maximumf %18, %19 : vector<8x128xf32>
    %21 = arith.truncf %20 : vector<8x128xf32> to vector<8x128xbf16>
    %c0_14 = arith.constant 0 : index
    %c0_15 = arith.constant 0 : index
    %22 = vector.load %arg7[%c0_14, %c0_15] : memref<128x128xbf16, #tpu.memory_space<vmem>>, vector<128x128xbf16>
    %cst_16 = arith.constant dense<0.000000e+00> : vector<8x128xf32>
    %23 = tpu.matmul %21, %22, %cst_16 {dimension_numbers = #tpu.dot_dimension_numbers<[1], [0], [0], [1], [0, 0, 1, 1], [], []>} : vector<8x128xbf16>, vector<128x128xbf16>, vector<8x128xf32> -> vector<8x128xf32>
    %c0_17 = arith.constant 0 : index
    %c0_18 = arith.constant 0 : index
    %24 = vector.load %arg8[%c0_17, %c0_18] : memref<1x128xf32, #tpu.memory_space<vmem>>, vector<1x128xf32>
    %25 = vector.broadcast %24 : vector<1x128xf32> to vector<8x128xf32>
    %26 = arith.addf %23, %25 : vector<8x128xf32>
    %cst_19 = arith.constant 0.000000e+00 : f32
    %27 = vector.broadcast %cst_19 : f32 to vector<8x128xf32>
    %28 = arith.maximumf %26, %27 : vector<8x128xf32>
    %29 = arith.truncf %28 : vector<8x128xf32> to vector<8x128xbf16>
    %c0_20 = arith.constant 0 : index
    %c0_21 = arith.constant 0 : index
    %30 = vector.load %arg9[%c0_20, %c0_21] : memref<128x128xbf16, #tpu.memory_space<vmem>>, vector<128x128xbf16>
    %cst_22 = arith.constant dense<0.000000e+00> : vector<8x128xf32>
    %31 = tpu.matmul %29, %30, %cst_22 {dimension_numbers = #tpu.dot_dimension_numbers<[1], [0], [0], [1], [0, 0, 1, 1], [], []>} : vector<8x128xbf16>, vector<128x128xbf16>, vector<8x128xf32> -> vector<8x128xf32>
    %c0_23 = arith.constant 0 : index
    %c0_24 = arith.constant 0 : index
    %32 = vector.load %arg10[%c0_23, %c0_24] : memref<1x128xf32, #tpu.memory_space<vmem>>, vector<1x128xf32>
    %33 = vector.broadcast %32 : vector<1x128xf32> to vector<8x128xf32>
    %34 = arith.addf %31, %33 : vector<8x128xf32>
    %c0_25 = arith.constant 0 : index
    %c0_26 = arith.constant 0 : index
    %35 = vector.load %arg11[%c0_25, %c0_26] : memref<8x128xf32, #tpu.memory_space<vmem>>, vector<8x128xf32>
    tpu.vector_store %arg11[%c0_25, %c0_26], %34 {strides = array<i32>} : memref<8x128xf32, #tpu.memory_space<vmem>>, vector<8x128xf32>,
    return
  }
  func.func @transform_0(%arg0: i32) -> (i32, i32) {
    %c0_i32 = arith.constant 0 : i32
    %c0_i32_0 = arith.constant 0 : i32
    return %arg0, %c0_i32 : i32, i32
  }
  func.func @transform_1(%arg0: i32) -> (i32, i32) {
    %c0_i32 = arith.constant 0 : i32
    %c0_i32_0 = arith.constant 0 : i32
    return %arg0, %c0_i32 : i32, i32
  }
  func.func @transform_2(%arg0: i32) -> (i32, i32) {
    %c0_i32 = arith.constant 0 : i32
    %c0_i32_0 = arith.constant 0 : i32
    %c0_i32_1 = arith.constant 0 : i32
    return %c0_i32, %c0_i32_0 : i32, i32
  }
  func.func @transform_3(%arg0: i32) -> (i32, i32) {
    %c0_i32 = arith.constant 0 : i32
    %c0_i32_0 = arith.constant 0 : i32
    %c0_i32_1 = arith.constant 0 : i32
    return %c0_i32, %c0_i32_0 : i32, i32
  }
  func.func @transform_4(%arg0: i32) -> (i32, i32) {
    %c0_i32 = arith.constant 0 : i32
    %c0_i32_0 = arith.constant 0 : i32
    %c0_i32_1 = arith.constant 0 : i32
    return %c0_i32, %c0_i32_0 : i32, i32
  }
  func.func @transform_5(%arg0: i32) -> (i32, i32) {
    %c0_i32 = arith.constant 0 : i32
    %c0_i32_0 = arith.constant 0 : i32
    %c0_i32_1 = arith.constant 0 : i32
    return %c0_i32, %c0_i32_0 : i32, i32
  }
  func.func @transform_6(%arg0: i32) -> (i32, i32) {
    %c0_i32 = arith.constant 0 : i32
    %c0_i32_0 = arith.constant 0 : i32
    %c0_i32_1 = arith.constant 0 : i32
    return %c0_i32, %c0_i32_0 : i32, i32
  }
  func.func @transform_7(%arg0: i32) -> (i32, i32) {
    %c0_i32 = arith.constant 0 : i32
    %c0_i32_0 = arith.constant 0 : i32
    %c0_i32_1 = arith.constant 0 : i32
    return %c0_i32, %c0_i32_0 : i32, i32
  }
  func.func @transform_8(%arg0: i32) -> (i32, i32) {
    %c0_i32 = arith.constant 0 : i32
    %c0_i32_0 = arith.constant 0 : i32
    %c0_i32_1 = arith.constant 0 : i32
    return %c0_i32, %c0_i32_0 : i32, i32
  }
  func.func @transform_9(%arg0: i32) -> (i32, i32) {
    %c0_i32 = arith.constant 0 : i32
    %c0_i32_0 = arith.constant 0 : i32
    %c0_i32_1 = arith.constant 0 : i32
    return %c0_i32, %c0_i32_0 : i32, i32
  }
  func.func @transform_10(%arg0: i32) -> (i32, i32) {
    %c0_i32 = arith.constant 0 : i32
    %c0_i32_0 = arith.constant 0 : i32
    return %arg0, %c0_i32 : i32, i32
  }
}

</mosaic_0001>

<bundles_post_ra>
// kernel: tpu_custom_call.1
= control target key start
LH: loop header
LB: loop body
LE: loop exit
PB: predicated region body
PF: predicated region fallthrough
CT: control target
= control target key end

     0   :  { %15 = vsyncpa [#allocation3], 0  ;;  %s1092_s0 = inlined_call_operand.vmem [shape: bf16[8,128], index: 0, kind: input, shape index: {}]   ;;  %s1093_s1 = inlined_call_operand.vmem [shape: f32[8,1], index: 1, kind: input, shape index: {}]   ;;  %s1094_s2 = inlined_call_operand.hbm [shape: bf16[128,128], index: 2, kind: input, shape index: {}]   ;;  %s1095_s3 = inlined_call_operand.vmem [shape: f32[1,128], index: 3, kind: input, shape index: {}]   ;;  %s1096_s4 = inlined_call_operand.hbm [shape: bf16[128,128], index: 4, kind: input, shape index: {}]   ;;  %s1097_s5 = inlined_call_operand.vmem [shape: f32[1,128], index: 5, kind: input, shape index: {}]   ;;  %s1098_s6 = inlined_call_operand.hbm [shape: bf16[128,128], index: 6, kind: input, shape index: {}]   ;;  %s1099_s7 = inlined_call_operand.vmem [shape: f32[1,128], index: 7, kind: input, shape index: {}]   ;;  %s1100_s8 = inlined_call_operand.hbm [shape: bf16[128,128], index: 8, kind: input, shape index: {}]   ;;  %s1101_s9 = inlined_call_operand.vmem [shape: f32[1,128], index: 9, kind: input, shape index: {}]   ;;  %s1102_s10 = inlined_call_operand.hbm [shape: f32[8,128], index: 10, kind: output, shape index: {}]  }
   0x1   :  { %16 = vsyncpa [#allocation6], 0 }
   0x2   :  { %17 = vsyncpa [#allocation9], 0 }
   0x3   :  { %18 = vsyncpa [#allocation4], 0  ;;  %s883_s13 = smov [#allocation5]   ;;  %s884_s15 = smov [#allocation2]  }
   0x4   :  { %s42_s14 = sshll.u32 %s883_s13, 4  ;;  %s28_s16 = sshll.u32 %s884_s15, 4  ;;  %s43_s14 = int_to_ptr.vmem [resolvable:$true] %s42_s14  ;;  %s948_s16 = int_to_ptr.vmem [resolvable:$true] %s28_s16 }
   0x5   :  { %s765_s19 = scalar_lea.hbm %s1096_s4, 1024 }
   0x6   :  { %p766_p0 = scmp.ne.s32.totalorder %s1096_s4, %s765_s19  ;;  %p769_p1 = scmp.lt.u32.totalorder %s765_s19, %s1096_s4 }
   0x8   :  { %p771_p2 = pnand %p769_p1, %p766_p0 }
   0xa   :  { %774 = shalt.err (!%p771_p2)
}
   0xb   :  { %s775_s24 = scalar_lea.vmem %s43_s14, 1024  ;;  %p780_p4 = scmp.lt.s32.totalorder %s43_s14, %s43_s14 }
   0xc   :  { %p776_p3 = scmp.ne.s32.totalorder %s43_s14, %s775_s24  ;;  %p781_p5 = scmp.lt.s32.totalorder %s775_s24, %s775_s24 }
   0xe   :  { %p782_p6 = por %p781_p5, %p780_p4 }
  0x10   :  { %p783_p7 = pnand %p782_p6, %p776_p3 }
  0x12   :  { %786 = shalt.err (!%p783_p7)
}
  0x13   :  { %s885_s25 = smov 64   ;;  %s886_s26 = smov 4  }
  0x14   :  { %48 = dma.hbm_to_vmem [thread:$0]  %s1096_s4, 1024, %s43_s14, [#allocation6], %s885_s25, %s885_s25, %s886_s26  }
  0x15   :  { %s787_s11 = scalar_lea.hbm %s1094_s2, 1024 }
  0x16   :  { %p788_p8 = scmp.ne.s32.totalorder %s1094_s2, %s787_s11  ;;  %p791_p9 = scmp.lt.u32.totalorder %s787_s11, %s1094_s2 }
  0x18   :  { %p793_p10 = pnand %p791_p9, %p788_p8 }
  0x1a   :  { %796 = shalt.err (!%p793_p10)
}
  0x1b   :  { %s797_s18 = scalar_lea.vmem %s948_s16, 1024  ;;  %p802_p12 = scmp.lt.s32.totalorder %s948_s16, %s948_s16 }
  0x1c   :  { %p798_p11 = scmp.ne.s32.totalorder %s948_s16, %s797_s18  ;;  %p803_p13 = scmp.lt.s32.totalorder %s797_s18, %s797_s18 }
  0x1e   :  { %p804_p0 = por %p803_p13, %p802_p12 }
  0x20   :  { %p805_p1 = pnand %p804_p0, %p798_p11 }
  0x22   :  { %808 = shalt.err (!%p805_p1)
}
  0x23   :  { %34 = dma.hbm_to_vmem [thread:$0]  %s1094_s2, 1024, %s948_s16, [#allocation3], %s885_s25, %s885_s25, %s886_s26  }
  0x24   :  { %s887_s19 = smov [#allocation7]   ;;  %s888_s21 = smov [#allocation8]  }
  0x25   :  { %s56_s20 = sshll.u32 %s887_s19, 4  ;;  %s70_s22 = sshll.u32 %s888_s21, 4  ;;  %s57_s20 = int_to_ptr.vmem [resolvable:$true] %s56_s20  ;;  %s985_s22 = int_to_ptr.vmem [resolvable:$true] %s70_s22 }
  0x26   :  { %s809_s27 = scalar_lea.hbm %s1098_s6, 1024 }
  0x27   :  { %p810_p2 = scmp.ne.s32.totalorder %s1098_s6, %s809_s27  ;;  %p813_p3 = scmp.lt.u32.totalorder %s809_s27, %s1098_s6 }
  0x29   :  { %p815_p4 = pnand %p813_p3, %p810_p2 }
  0x2b   :  { %818 = shalt.err (!%p815_p4)
}
  0x2c   :  { %s819_s2 = scalar_lea.vmem %s57_s20, 1024  ;;  %p824_p6 = scmp.lt.s32.totalorder %s57_s20, %s57_s20 }
  0x2d   :  { %p820_p5 = scmp.ne.s32.totalorder %s57_s20, %s819_s2  ;;  %p825_p7 = scmp.lt.s32.totalorder %s819_s2, %s819_s2 }
  0x2f   :  { %p826_p8 = por %p825_p7, %p824_p6 }
  0x31   :  { %p827_p9 = pnand %p826_p8, %p820_p5 }
  0x33   :  { %830 = shalt.err (!%p827_p9)
}
  0x34   :  { %62 = dma.hbm_to_vmem [thread:$0]  %s1098_s6, 1024, %s57_s20, [#allocation6], %s885_s25, %s885_s25, %s886_s26  }
  0x35   :  { %s831_s17 = scalar_lea.hbm %s1100_s8, 1024 }
  0x36   :  { %p832_p10 = scmp.ne.s32.totalorder %s1100_s8, %s831_s17  ;;  %p835_p11 = scmp.lt.u32.totalorder %s831_s17, %s1100_s8 }
  0x38   :  { %p837_p12 = pnand %p835_p11, %p832_p10 }
  0x3a   :  { %840 = shalt.err (!%p837_p12)
}
  0x3b   :  { %s841_s21 = scalar_lea.vmem %s985_s22, 1024  ;;  %p846_p0 = scmp.lt.s32.totalorder %s985_s22, %s985_s22 }
  0x3c   :  { %p842_p13 = scmp.ne.s32.totalorder %s985_s22, %s841_s21  ;;  %p847_p1 = scmp.lt.s32.totalorder %s841_s21, %s841_s21 }
  0x3e   :  { %p848_p2 = por %p847_p1, %p846_p0 }
  0x40   :  { %p849_p3 = pnand %p848_p2, %p842_p13 }
  0x42   :  { %852 = shalt.err (!%p849_p3)
}
  0x43   :  { %76 = dma.hbm_to_vmem [thread:$0]  %s1100_s8, 1024, %s985_s22, [#allocation9], %s885_s25, %s885_s25, %s886_s26  }
  0x44   :  { %875 = dma.done.wait [#allocation3], 1024  }
  0x45   :  { %876 = vsyncadd [#allocation3], 4294966272 }
  0x46   :  { %877 = dma.done.wait [#allocation6], 2048  }
  0x47   :  { %878 = vsyncadd [#allocation6], 4294965248 }
  0x48   :  { %879 = dma.done.wait [#allocation9], 1024  }
  0x49   :  { %880 = vsyncadd [#allocation9], 4294966272  ;;  %v889_v0 = vmov 0   ;;  %v890_v1 = vmov 0.0   ;;  %v93_v2 = vld [vmem:[%s1093_s1] sm:$0xff]  ;;  %v734_v4 = vld [vmem:[#allocation2 + $0x8] sm:$0xff]  }
  0x4a   :  { %732 = vset.pattern.permute.xlu0 %v889_v0  ;;  %642 = vmatprep.subr.bf16.mxu0 %v890_v1  ;;  %v733_v3 = vld [vmem:[#allocation2] sm:$0xff]   ;;  %vm891_vm0 = vmmov 0   ;;  %v735_v5 = vld [vmem:[#allocation2 + $0x10] sm:$0xff]   ;;  %v736_v7 = vld [vmem:[#allocation2 + $0x18] sm:$0xff]   ;;  %s892_s29 = smov [#allocation10]  }
  0x4b   :  { %662 = vmatprep.subr.bf16.mxu1 %v890_v1  ;;  %97 = vperm.xlu0 %732, %v93_v2   ;;  %v741_v6 = vld [vmem:[#allocation5] sm:$0xff]   ;;  %v742_v8 = vld [vmem:[#allocation5 + $0x8] sm:$0xff]   ;;  %v743_v10 = vld [vmem:[#allocation5 + $0x10] sm:$0xff]   ;;  %s559_s30 = sshll.u32 %s892_s29, 4  ;;  %s560_s30 = int_to_ptr.vmem [resolvable:$true] %s559_s30 }
  0x4c   :  { %643 = vmatpush3.bf16.msra.mxu0 %v733_v3  ;;  %658 = vmatprep.mubr.msk.bf16.mxu0 %vm891_vm0, %v890_v1  ;;  %v737_v9 = vld [vmem:[#allocation2 + $0x20] sm:$0xff]   ;;  %v738_v11 = vld [vmem:[#allocation2 + $0x28] sm:$0xff]   ;;  %v744_v12 = vld [vmem:[#allocation5 + $0x18] sm:$0xff]   ;;  %p858_p5 = scmp.lt.s32.totalorder %s560_s30, %s560_s30 }
  0x4d   :  { %644 = vmatprep.subr.bf16.mxu0 %v890_v1  ;;  %678 = vmatprep.mubr.msk.bf16.mxu1 %vm891_vm0, %v890_v1  ;;  %v739_v13 = vld [vmem:[#allocation2 + $0x30] sm:$0xff]   ;;  %v745_v14 = vld [vmem:[#allocation5 + $0x20] sm:$0xff]   ;;  %v740_v15 = vld [vmem:[#allocation2 + $0x38] sm:$0xff]  }
  0x4e   :  { %663 = vmatpush3.bf16.msra.mxu1 %v741_v6  ;;  %v746_v16 = vld [vmem:[#allocation5 + $0x28] sm:$0xff]   ;;  %v92_v17 = vld [vmem:[%s1092_s0] sm:$0xf]  ;;  %v747_v22 = vld [vmem:[#allocation5 + $0x30] sm:$0xff]  }
  0x4f   :  { %664 = vmatprep.subr.bf16.mxu1 %v890_v1  ;;  %v94_v18 = vunpack.c.l.bf16 %v92_v17  ;;  %v748_v23 = vld [vmem:[#allocation5 + $0x38] sm:$0xff]   ;;  %v749_v24 = vld [vmem:[#allocation7] sm:$0xff]   ;;  %v750_v25 = vld [vmem:[#allocation7 + $0x8] sm:$0xff]  }
  0x50   :  { %645 = vmatpush3.bf16.msra.mxu0 %v734_v4  ;;  %v751_v26 = vld [vmem:[#allocation7 + $0x10] sm:$0xff]   ;;  %v752_v27 = vld [vmem:[#allocation7 + $0x18] sm:$0xff]   ;;  %v753_v28 = vld [vmem:[#allocation7 + $0x20] sm:$0xff]  }
  0x51   :  { %646 = vmatprep.subr.bf16.mxu0 %v890_v1  ;;  %v754_v29 = vld [vmem:[#allocation7 + $0x28] sm:$0xff]   ;;  %v570_v30 = vld [vmem:[%s1095_s3] ss:$0 sm:$0xff]  ;;  %v755_v38 = vld [vmem:[#allocation7 + $0x30] sm:$0xff]  }
  0x52   :  { %665 = vmatpush3.bf16.msra.mxu1 %v742_v8  ;;  %v756_v39 = vld [vmem:[#allocation7 + $0x38] sm:$0xff]   ;;  %v757_v40 = vld [vmem:[#allocation8] sm:$0xff]   ;;  %v758_v41 = vld [vmem:[#allocation8 + $0x8] sm:$0xff]  }
  0x53   :  { %666 = vmatprep.subr.bf16.mxu1 %v890_v1  ;;  %v759_v42 = vld [vmem:[#allocation8 + $0x10] sm:$0xff]   ;;  %v760_v43 = vld [vmem:[#allocation8 + $0x18] sm:$0xff]   ;;  %v761_v44 = vld [vmem:[#allocation8 + $0x20] sm:$0xff]  }
  0x54   :  { %647 = vmatpush3.bf16.msra.mxu0 %v735_v5  ;;  %v762_v45 = vld [vmem:[#allocation8 + $0x28] sm:$0xff]   ;;  %v579_v46 = vld [vmem:[%s1097_s5] ss:$0 sm:$0xff]  ;;  %v763_v54 = vld [vmem:[#allocation8 + $0x30] sm:$0xff]  }
  0x55   :  { %648 = vmatprep.subr.bf16.mxu0 %v890_v1  ;;  %v764_v55 = vld [vmem:[#allocation8 + $0x38] sm:$0xff]   ;;  %v588_v56 = vld [vmem:[%s1099_s7] ss:$0 sm:$0xff]  ;;  %s853_s7 = scalar_lea.vmem %s560_s30, 128 }
  0x56   :  { %667 = vmatpush3.bf16.msra.mxu1 %v743_v10  ;;  %v597_v0 = vld [vmem:[%s1101_s9] ss:$0 sm:$0xff]  ;;  %p854_p4 = scmp.ne.s32.totalorder %s560_s30, %s853_s7  ;;  %p859_p6 = scmp.lt.s32.totalorder %s853_s7, %s853_s7 }
  0x57   :  { %668 = vmatprep.subr.bf16.mxu1 %v890_v1 }
  0x58   :  { %649 = vmatpush3.bf16.msra.mxu0 %v736_v7  ;;  %p860_p7 = por %p859_p6, %p858_p5 }
  0x59   :  { %650 = vmatprep.subr.bf16.mxu0 %v890_v1 }
  0x5a   :  { %669 = vmatpush3.bf16.msra.mxu1 %v744_v12  ;;  %p861_p8 = pnand %p860_p7, %p854_p4 }
  0x5b   :  { %670 = vmatprep.subr.bf16.mxu1 %v890_v1 }
  0x5c   :  { %651 = vmatpush3.bf16.msra.mxu0 %v737_v9 }
  0x5d   :  { %652 = vmatprep.subr.bf16.mxu0 %v890_v1 }
  0x5e   :  { %671 = vmatpush3.bf16.msra.mxu1 %v745_v14 }
  0x5f   :  { %672 = vmatprep.subr.bf16.mxu1 %v890_v1 }
  0x60   :  { %653 = vmatpush3.bf16.msra.mxu0 %v738_v11 }
  0x61   :  { %654 = vmatprep.subr.bf16.mxu0 %v890_v1 }
  0x62   :  { %673 = vmatpush3.bf16.msra.mxu1 %v746_v16 }
  0x63   :  { %674 = vmatprep.subr.bf16.mxu1 %v890_v1 }
  0x64   :  { %655 = vmatpush3.bf16.msra.mxu0 %v739_v13 }
  0x65   :  { %656 = vmatprep.subr.bf16.mxu0 %v890_v1 }
  0x66   :  { %675 = vmatpush3.bf16.msra.mxu1 %v747_v22 }
  0x67   :  { %676 = vmatprep.subr.bf16.mxu1 %v890_v1 }
  0x68   :  { %657 = vmatpush3.bf16.msra.mxu0 %v740_v15 }
  0x69   :  { %682 = vmatprep.subr.bf16.mxu0 %v890_v1 }
  0x6a   :  { %677 = vmatpush3.bf16.msra.mxu1 %v748_v23 }
  0x6b   :  { %702 = vmatprep.subr.bf16.mxu1 %v890_v1 }
  0xca   :  { %v98_v19 = vpop.permute.xlu0 %97 }
  0xcb   :  { %v100_v20 = vmul.f32 %v98_v19, %v94_v18 }
  0xcd   :  { %v101_v21 = vpack.c.bf16 %v100_v20, %v100_v20 }
  0xcf   :  { %659 = vmatmul.mubr.bf16.vlgmr.msra.gmra.mrb[0].mxu0 %v101_v21 }
  0xd0   :  { %698 = vmatprep.mubr.msk.bf16.mxu0 %vm891_vm0, %v890_v1  ;;  %683 = vmatpush3.bf16.msra.mxu0 %v749_v24 }
  0xd1   :  { %684 = vmatprep.subr.bf16.mxu0 %v890_v1 }
  0xd4   :  { %685 = vmatpush3.bf16.msra.mxu0 %v750_v25 }
  0xd5   :  { %686 = vmatprep.subr.bf16.mxu0 %v890_v1 }
  0xd8   :  { %687 = vmatpush3.bf16.msra.mxu0 %v751_v26 }
  0xd9   :  { %688 = vmatprep.subr.bf16.mxu0 %v890_v1 }
  0xdc   :  { %689 = vmatpush3.bf16.msra.mxu0 %v752_v27 }
  0xdd   :  { %690 = vmatprep.subr.bf16.mxu0 %v890_v1 }
  0xe0   :  { %691 = vmatpush3.bf16.msra.mxu0 %v753_v28 }
  0xe1   :  { %692 = vmatprep.subr.bf16.mxu0 %v890_v1 }
  0xe4   :  { %693 = vmatpush3.bf16.msra.mxu0 %v754_v29 }
  0xe5   :  { %694 = vmatprep.subr.bf16.mxu0 %v890_v1 }
  0xe8   :  { %695 = vmatpush3.bf16.msra.mxu0 %v755_v38 }
  0xe9   :  { %696 = vmatprep.subr.bf16.mxu0 %v890_v1 }
  0xec   :  { %697 = vmatpush3.bf16.msra.mxu0 %v756_v39 }
 0x1a2   :  { %v207_v31 = vpop.f32.mrb[0].mxu0 }
 0x1a3   :  { %v208_v32 = vadd.f32 %v570_v30, %v207_v31  ;;  %v660_v33 = vpop.f32.mrb[1].mxu0 }
 0x1a4   :  { %v210_v34 = vpop.f32.mrb[2].mxu0 }
 0x1a5   :  { %v213_v35 = vmax.f32 %v208_v32, 0.0  ;;  %v661_v36 = vpop.f32.mrb[3].mxu0 }
 0x1a7   :  { %v214_v37 = vpack.c.bf16 %v213_v35, %v213_v35 }
 0x1a9   :  { %679 = vmatmul.mubr.bf16.vlgmr.msra.gmra.mrb[0].mxu1 %v214_v37 }
 0x1aa   :  { %718 = vmatprep.mubr.msk.bf16.mxu1 %vm891_vm0, %v890_v1  ;;  %703 = vmatpush3.bf16.msra.mxu1 %v757_v40 }
 0x1ab   :  { %704 = vmatprep.subr.bf16.mxu1 %v890_v1 }
 0x1ae   :  { %705 = vmatpush3.bf16.msra.mxu1 %v758_v41 }
 0x1af   :  { %706 = vmatprep.subr.bf16.mxu1 %v890_v1 }
 0x1b2   :  { %707 = vmatpush3.bf16.msra.mxu1 %v759_v42 }
 0x1b3   :  { %708 = vmatprep.subr.bf16.mxu1 %v890_v1 }
 0x1b6   :  { %709 = vmatpush3.bf16.msra.mxu1 %v760_v43 }
 0x1b7   :  { %710 = vmatprep.subr.bf16.mxu1 %v890_v1 }
 0x1ba   :  { %711 = vmatpush3.bf16.msra.mxu1 %v761_v44 }
 0x1bb   :  { %712 = vmatprep.subr.bf16.mxu1 %v890_v1 }
 0x1be   :  { %713 = vmatpush3.bf16.msra.mxu1 %v762_v45 }
 0x1bf   :  { %714 = vmatprep.subr.bf16.mxu1 %v890_v1 }
 0x1c2   :  { %715 = vmatpush3.bf16.msra.mxu1 %v763_v54 }
 0x1c3   :  { %716 = vmatprep.subr.bf16.mxu1 %v890_v1 }
 0x1c6   :  { %717 = vmatpush3.bf16.msra.mxu1 %v764_v55 }
 0x27c   :  { %v320_v47 = vpop.f32.mrb[0].mxu1 }
 0x27d   :  { %v321_v48 = vadd.f32 %v579_v46, %v320_v47  ;;  %v680_v49 = vpop.f32.mrb[1].mxu1 }
 0x27e   :  { %v323_v50 = vpop.f32.mrb[2].mxu1 }
 0x27f   :  { %v326_v51 = vmax.f32 %v321_v48, 0.0  ;;  %v681_v52 = vpop.f32.mrb[3].mxu1 }
 0x281   :  { %v327_v53 = vpack.c.bf16 %v326_v51, %v326_v51 }
 0x283   :  { %699 = vmatmul.mubr.bf16.vlgmr.msra.gmra.mrb[4].mxu0 %v327_v53 }
 0x356   :  { %v433_v57 = vpop.f32.mrb[4].mxu0 }
 0x357   :  { %v434_v58 = vadd.f32 %v588_v56, %v433_v57  ;;  %v700_v59 = vpop.f32.mrb[5].mxu0 }
 0x358   :  { %v436_v60 = vpop.f32.mrb[6].mxu0 }
 0x359   :  { %v439_v61 = vmax.f32 %v434_v58, 0.0  ;;  %v701_v62 = vpop.f32.mrb[7].mxu0 }
 0x35b   :  { %v440_v63 = vpack.c.bf16 %v439_v61, %v439_v61 }
 0x35d   :  { %719 = vmatmul.mubr.bf16.vlgmr.msra.gmra.mrb[4].mxu1 %v440_v63 }
 0x430   :  { %v546_v1 = vpop.f32.mrb[4].mxu1 }
 0x431   :  { %v547_v2 = vadd.f32 %v597_v0, %v546_v1  ;;  %v720_v3 = vpop.f32.mrb[5].mxu1 }
 0x432   :  { %v549_v4 = vpop.f32.mrb[6].mxu1 }
 0x433   :  { %552 = vst [vmem:[#allocation10] sm:$0xff] %v547_v2  ;;  %v721_v5 = vpop.f32.mrb[7].mxu1 }
 0x434   :  { %864 = shalt.err (!%p861_p8)
}
 0x435   :  { %s865_s9 = scalar_lea.hbm %s1102_s10, 128 }
 0x436   :  { %p866_p9 = scmp.ne.s32.totalorder %s1102_s10, %s865_s9  ;;  %p869_p10 = scmp.lt.u32.totalorder %s865_s9, %s1102_s10 }
 0x438   :  { %p871_p11 = pnand %p869_p10, %p866_p9 }
 0x43a   :  { %874 = shalt.err (!%p871_p11)
}
 0x43b   :  { %562 = dma.vmem_to_hbm [thread:$0]  %s560_s30, 128, %s1102_s10, [#allocation4]  }
 0x43c   :  { %881 = dma.done.wait [#allocation4], 128  }
 0x43d   :  { %882 = vsyncadd [#allocation4], 4294967168 }
 0x43e   :  { %566 = vsyncpa [#allocation3], 1 }
 0x43f   :  { %567 = vsyncpa [#allocation6], 1 }
 0x440   :  { %568 = vsyncpa [#allocation9], 1 }
 0x441   :  { %569 = vsyncpa [#allocation4], 1 }

// kernel: tpu_custom_call.1
= control target key start
LH: loop header
LB: loop body
LE: loop exit
PB: predicated region body
PF: predicated region fallthrough
CT: control target
= control target key end

     0   :  { %15 = vsyncpa [#allocation3], 0  ;;  %s1092_s0 = inlined_call_operand.vmem [shape: bf16[8,128], index: 0, kind: input, shape index: {}]   ;;  %s1093_s1 = inlined_call_operand.vmem [shape: f32[8,1], index: 1, kind: input, shape index: {}]   ;;  %s1094_s2 = inlined_call_operand.hbm [shape: bf16[128,128], index: 2, kind: input, shape index: {}]   ;;  %s1095_s3 = inlined_call_operand.vmem [shape: f32[1,128], index: 3, kind: input, shape index: {}]   ;;  %s1096_s4 = inlined_call_operand.hbm [shape: bf16[128,128], index: 4, kind: input, shape index: {}]   ;;  %s1097_s5 = inlined_call_operand.vmem [shape: f32[1,128], index: 5, kind: input, shape index: {}]   ;;  %s1098_s6 = inlined_call_operand.hbm [shape: bf16[128,128], index: 6, kind: input, shape index: {}]   ;;  %s1099_s7 = inlined_call_operand.vmem [shape: f32[1,128], index: 7, kind: input, shape index: {}]   ;;  %s1100_s8 = inlined_call_operand.hbm [shape: bf16[128,128], index: 8, kind: input, shape index: {}]   ;;  %s1101_s9 = inlined_call_operand.vmem [shape: f32[1,128], index: 9, kind: input, shape index: {}]   ;;  %s1102_s10 = inlined_call_operand.hbm [shape: f32[8,128], index: 10, kind: output, shape index: {}]  }
   0x1   :  { %16 = vsyncpa [#allocation6], 0 }
   0x2   :  { %17 = vsyncpa [#allocation9], 0 }
   0x3   :  { %18 = vsyncpa [#allocation4], 0  ;;  %s883_s13 = smov [#allocation5]   ;;  %s884_s15 = smov [#allocation2]  }
   0x4   :  { %s42_s14 = sshll.u32 %s883_s13, 4  ;;  %s28_s16 = sshll.u32 %s884_s15, 4  ;;  %s43_s14 = int_to_ptr.vmem [resolvable:$true] %s42_s14  ;;  %s948_s16 = int_to_ptr.vmem [resolvable:$true] %s28_s16 }
   0x5   :  { %s765_s19 = scalar_lea.hbm %s1096_s4, 1024 }
   0x6   :  { %p766_p0 = scmp.ne.s32.totalorder %s1096_s4, %s765_s19  ;;  %p769_p1 = scmp.lt.u32.totalorder %s765_s19, %s1096_s4 }
   0x8   :  { %p771_p2 = pnand %p769_p1, %p766_p0 }
   0xa   :  { %774 = shalt.err (!%p771_p2)
}
   0xb   :  { %s775_s24 = scalar_lea.vmem %s43_s14, 1024  ;;  %p780_p4 = scmp.lt.s32.totalorder %s43_s14, %s43_s14 }
   0xc   :  { %p776_p3 = scmp.ne.s32.totalorder %s43_s14, %s775_s24  ;;  %p781_p5 = scmp.lt.s32.totalorder %s775_s24, %s775_s24 }
   0xe   :  { %p782_p6 = por %p781_p5, %p780_p4 }
  0x10   :  { %p783_p7 = pnand %p782_p6, %p776_p3 }
  0x12   :  { %786 = shalt.err (!%p783_p7)
}
  0x13   :  { %s885_s25 = smov 64   ;;  %s886_s26 = smov 4  }
  0x14   :  { %48 = dma.hbm_to_vmem [thread:$0]  %s1096_s4, 1024, %s43_s14, [#allocation6], %s885_s25, %s885_s25, %s886_s26  }
  0x15   :  { %s787_s11 = scalar_lea.hbm %s1094_s2, 1024 }
  0x16   :  { %p788_p8 = scmp.ne.s32.totalorder %s1094_s2, %s787_s11  ;;  %p791_p9 = scmp.lt.u32.totalorder %s787_s11, %s1094_s2 }
  0x18   :  { %p793_p10 = pnand %p791_p9, %p788_p8 }
  0x1a   :  { %796 = shalt.err (!%p793_p10)
}
  0x1b   :  { %s797_s18 = scalar_lea.vmem %s948_s16, 1024  ;;  %p802_p12 = scmp.lt.s32.totalorder %s948_s16, %s948_s16 }
  0x1c   :  { %p798_p11 = scmp.ne.s32.totalorder %s948_s16, %s797_s18  ;;  %p803_p13 = scmp.lt.s32.totalorder %s797_s18, %s797_s18 }
  0x1e   :  { %p804_p0 = por %p803_p13, %p802_p12 }
  0x20   :  { %p805_p1 = pnand %p804_p0, %p798_p11 }
  0x22   :  { %808 = shalt.err (!%p805_p1)
}
  0x23   :  { %34 = dma.hbm_to_vmem [thread:$0]  %s1094_s2, 1024, %s948_s16, [#allocation3], %s885_s25, %s885_s25, %s886_s26  }
  0x24   :  { %s887_s19 = smov [#allocation7]   ;;  %s888_s21 = smov [#allocation8]  }
  0x25   :  { %s56_s20 = sshll.u32 %s887_s19, 4  ;;  %s70_s22 = sshll.u32 %s888_s21, 4  ;;  %s57_s20 = int_to_ptr.vmem [resolvable:$true] %s56_s20  ;;  %s985_s22 = int_to_ptr.vmem [resolvable:$true] %s70_s22 }
  0x26   :  { %s809_s27 = scalar_lea.hbm %s1098_s6, 1024 }
  0x27   :  { %p810_p2 = scmp.ne.s32.totalorder %s1098_s6, %s809_s27  ;;  %p813_p3 = scmp.lt.u32.totalorder %s809_s27, %s1098_s6 }
  0x29   :  { %p815_p4 = pnand %p813_p3, %p810_p2 }
  0x2b   :  { %818 = shalt.err (!%p815_p4)
}
  0x2c   :  { %s819_s2 = scalar_lea.vmem %s57_s20, 1024  ;;  %p824_p6 = scmp.lt.s32.totalorder %s57_s20, %s57_s20 }
  0x2d   :  { %p820_p5 = scmp.ne.s32.totalorder %s57_s20, %s819_s2  ;;  %p825_p7 = scmp.lt.s32.totalorder %s819_s2, %s819_s2 }
  0x2f   :  { %p826_p8 = por %p825_p7, %p824_p6 }
  0x31   :  { %p827_p9 = pnand %p826_p8, %p820_p5 }
  0x33   :  { %830 = shalt.err (!%p827_p9)
}
  0x34   :  { %62 = dma.hbm_to_vmem [thread:$0]  %s1098_s6, 1024, %s57_s20, [#allocation6], %s885_s25, %s885_s25, %s886_s26  }
  0x35   :  { %s831_s17 = scalar_lea.hbm %s1100_s8, 1024 }
  0x36   :  { %p832_p10 = scmp.ne.s32.totalorder %s1100_s8, %s831_s17  ;;  %p835_p11 = scmp.lt.u32.totalorder %s831_s17, %s1100_s8 }
  0x38   :  { %p837_p12 = pnand %p835_p11, %p832_p10 }
  0x3a   :  { %840 = shalt.err (!%p837_p12)
}
  0x3b   :  { %s841_s21 = scalar_lea.vmem %s985_s22, 1024  ;;  %p846_p0 = scmp.lt.s32.totalorder %s985_s22, %s985_s22 }
  0x3c   :  { %p842_p13 = scmp.ne.s32.totalorder %s985_s22, %s841_s21  ;;  %p847_p1 = scmp.lt.s32.totalorder %s841_s21, %s841_s21 }
  0x3e   :  { %p848_p2 = por %p847_p1, %p846_p0 }
  0x40   :  { %p849_p3 = pnand %p848_p2, %p842_p13 }
  0x42   :  { %852 = shalt.err (!%p849_p3)
}
  0x43   :  { %76 = dma.hbm_to_vmem [thread:$0]  %s1100_s8, 1024, %s985_s22, [#allocation9], %s885_s25, %s885_s25, %s886_s26  }
  0x44   :  { %875 = dma.done.wait [#allocation3], 1024  }
  0x45   :  { %876 = vsyncadd [#allocation3], 4294966272 }
  0x46   :  { %877 = dma.done.wait [#allocation6], 2048  }
  0x47   :  { %878 = vsyncadd [#allocation6], 4294965248 }
  0x48   :  { %879 = dma.done.wait [#allocation9], 1024  }
  0x49   :  { %880 = vsyncadd [#allocation9], 4294966272  ;;  %v889_v0 = vmov 0   ;;  %v890_v1 = vmov 0.0   ;;  %v93_v2 = vld [vmem:[%s1093_s1] sm:$0xff]  ;;  %v734_v4 = vld [vmem:[#allocation2 + $0x8] sm:$0xff]  }
  0x4a   :  { %732 = vset.pattern.permute.xlu0 %v889_v0  ;;  %642 = vmatprep.subr.bf16.mxu0 %v890_v1  ;;  %v733_v3 = vld [vmem:[#allocation2] sm:$0xff]   ;;  %vm891_vm0 = vmmov 0   ;;  %v735_v5 = vld [vmem:[#allocation2 + $0x10] sm:$0xff]   ;;  %v736_v7 = vld [vmem:[#allocation2 + $0x18] sm:$0xff]   ;;  %s892_s29 = smov [#allocation10]  }
  0x4b   :  { %662 = vmatprep.subr.bf16.mxu1 %v890_v1  ;;  %97 = vperm.xlu0 %732, %v93_v2   ;;  %v741_v6 = vld [vmem:[#allocation5] sm:$0xff]   ;;  %v742_v8 = vld [vmem:[#allocation5 + $0x8] sm:$0xff]   ;;  %v743_v10 = vld [vmem:[#allocation5 + $0x10] sm:$0xff]   ;;  %s559_s30 = sshll.u32 %s892_s29, 4  ;;  %s560_s30 = int_to_ptr.vmem [resolvable:$true] %s559_s30 }
  0x4c   :  { %643 = vmatpush3.bf16.msra.mxu0 %v733_v3  ;;  %658 = vmatprep.mubr.msk.bf16.mxu0 %vm891_vm0, %v890_v1  ;;  %v737_v9 = vld [vmem:[#allocation2 + $0x20] sm:$0xff]   ;;  %v738_v11 = vld [vmem:[#allocation2 + $0x28] sm:$0xff]   ;;  %v744_v12 = vld [vmem:[#allocation5 + $0x18] sm:$0xff]   ;;  %p858_p5 = scmp.lt.s32.totalorder %s560_s30, %s560_s30 }
  0x4d   :  { %644 = vmatprep.subr.bf16.mxu0 %v890_v1  ;;  %678 = vmatprep.mubr.msk.bf16.mxu1 %vm891_vm0, %v890_v1  ;;  %v739_v13 = vld [vmem:[#allocation2 + $0x30] sm:$0xff]   ;;  %v745_v14 = vld [vmem:[#allocation5 + $0x20] sm:$0xff]   ;;  %v740_v15 = vld [vmem:[#allocation2 + $0x38] sm:$0xff]  }
  0x4e   :  { %663 = vmatpush3.bf16.msra.mxu1 %v741_v6  ;;  %v746_v16 = vld [vmem:[#allocation5 + $0x28] sm:$0xff]   ;;  %v92_v17 = vld [vmem:[%s1092_s0] sm:$0xf]  ;;  %v747_v22 = vld [vmem:[#allocation5 + $0x30] sm:$0xff]  }
  0x4f   :  { %664 = vmatprep.subr.bf16.mxu1 %v890_v1  ;;  %v94_v18 = vunpack.c.l.bf16 %v92_v17  ;;  %v748_v23 = vld [vmem:[#allocation5 + $0x38] sm:$0xff]   ;;  %v749_v24 = vld [vmem:[#allocation7] sm:$0xff]   ;;  %v750_v25 = vld [vmem:[#allocation7 + $0x8] sm:$0xff]  }
  0x50   :  { %645 = vmatpush3.bf16.msra.mxu0 %v734_v4  ;;  %v751_v26 = vld [vmem:[#allocation7 + $0x10] sm:$0xff]   ;;  %v752_v27 = vld [vmem:[#allocation7 + $0x18] sm:$0xff]   ;;  %v753_v28 = vld [vmem:[#allocation7 + $0x20] sm:$0xff]  }
  0x51   :  { %646 = vmatprep.subr.bf16.mxu0 %v890_v1  ;;  %v754_v29 = vld [vmem:[#allocation7 + $0x28] sm:$0xff]   ;;  %v570_v30 = vld [vmem:[%s1095_s3] ss:$0 sm:$0xff]  ;;  %v755_v38 = vld [vmem:[#allocation7 + $0x30] sm:$0xff]  }
  0x52   :  { %665 = vmatpush3.bf16.msra.mxu1 %v742_v8  ;;  %v756_v39 = vld [vmem:[#allocation7 + $0x38] sm:$0xff]   ;;  %v757_v40 = vld [vmem:[#allocation8] sm:$0xff]   ;;  %v758_v41 = vld [vmem:[#allocation8 + $0x8] sm:$0xff]  }
  0x53   :  { %666 = vmatprep.subr.bf16.mxu1 %v890_v1  ;;  %v759_v42 = vld [vmem:[#allocation8 + $0x10] sm:$0xff]   ;;  %v760_v43 = vld [vmem:[#allocation8 + $0x18] sm:$0xff]   ;;  %v761_v44 = vld [vmem:[#allocation8 + $0x20] sm:$0xff]  }
  0x54   :  { %647 = vmatpush3.bf16.msra.mxu0 %v735_v5  ;;  %v762_v45 = vld [vmem:[#allocation8 + $0x28] sm:$0xff]   ;;  %v579_v46 = vld [vmem:[%s1097_s5] ss:$0 sm:$0xff]  ;;  %v763_v54 = vld [vmem:[#allocation8 + $0x30] sm:$0xff]  }
  0x55   :  { %648 = vmatprep.subr.bf16.mxu0 %v890_v1  ;;  %v764_v55 = vld [vmem:[#allocation8 + $0x38] sm:$0xff]   ;;  %v588_v56 = vld [vmem:[%s1099_s7] ss:$0 sm:$0xff]  ;;  %s853_s7 = scalar_lea.vmem %s560_s30, 128 }
  0x56   :  { %667 = vmatpush3.bf16.msra.mxu1 %v743_v10  ;;  %v597_v0 = vld [vmem:[%s1101_s9] ss:$0 sm:$0xff]  ;;  %p854_p4 = scmp.ne.s32.totalorder %s560_s30, %s853_s7  ;;  %p859_p6 = scmp.lt.s32.totalorder %s853_s7, %s853_s7 }
  0x57   :  { %668 = vmatprep.subr.bf16.mxu1 %v890_v1 }
  0x58   :  { %649 = vmatpush3.bf16.msra.mxu0 %v736_v7  ;;  %p860_p7 = por %p859_p6, %p858_p5 }
  0x59   :  { %650 = vmatprep.subr.bf16.mxu0 %v890_v1 }
  0x5a   :  { %669 = vmatpush3.bf16.msra.mxu1 %v744_v12  ;;  %p861_p8 = pnand %p860_p7, %p854_p4 }
  0x5b   :  { %670 = vmatprep.subr.bf16.mxu1 %v890_v1 }
  0x5c   :  { %651 = vmatpush3.bf16.msra.mxu0 %v737_v9 }
  0x5d   :  { %652 = vmatprep.subr.bf16.mxu0 %v890_v1 }
  0x5e   :  { %671 = vmatpush3.bf16.msra.mxu1 %v745_v14 }
  0x5f   :  { %672 = vmatprep.subr.bf16.mxu1 %v890_v1 }
  0x60   :  { %653 = vmatpush3.bf16.msra.mxu0 %v738_v11 }
  0x61   :  { %654 = vmatprep.subr.bf16.mxu0 %v890_v1 }
  0x62   :  { %673 = vmatpush3.bf16.msra.mxu1 %v746_v16 }
  0x63   :  { %674 = vmatprep.subr.bf16.mxu1 %v890_v1 }
  0x64   :  { %655 = vmatpush3.bf16.msra.mxu0 %v739_v13 }
  0x65   :  { %656 = vmatprep.subr.bf16.mxu0 %v890_v1 }
  0x66   :  { %675 = vmatpush3.bf16.msra.mxu1 %v747_v22 }
  0x67   :  { %676 = vmatprep.subr.bf16.mxu1 %v890_v1 }
  0x68   :  { %657 = vmatpush3.bf16.msra.mxu0 %v740_v15 }
  0x69   :  { %682 = vmatprep.subr.bf16.mxu0 %v890_v1 }
  0x6a   :  { %677 = vmatpush3.bf16.msra.mxu1 %v748_v23 }
  0x6b   :  { %702 = vmatprep.subr.bf16.mxu1 %v890_v1 }
  0xca   :  { %v98_v19 = vpop.permute.xlu0 %97 }
  0xcb   :  { %v100_v20 = vmul.f32 %v98_v19, %v94_v18 }
  0xcd   :  { %v101_v21 = vpack.c.bf16 %v100_v20, %v100_v20 }
  0xcf   :  { %659 = vmatmul.mubr.bf16.vlgmr.msra.gmra.mrb[0].mxu0 %v101_v21 }
  0xd0   :  { %698 = vmatprep.mubr.msk.bf16.mxu0 %vm891_vm0, %v890_v1  ;;  %683 = vmatpush3.bf16.msra.mxu0 %v749_v24 }
  0xd1   :  { %684 = vmatprep.subr.bf16.mxu0 %v890_v1 }
  0xd4   :  { %685 = vmatpush3.bf16.msra.mxu0 %v750_v25 }
  0xd5   :  { %686 = vmatprep.subr.bf16.mxu0 %v890_v1 }
  0xd8   :  { %687 = vmatpush3.bf16.msra.mxu0 %v751_v26 }
  0xd9   :  { %688 = vmatprep.subr.bf16.mxu0 %v890_v1 }
  0xdc   :  { %689 = vmatpush3.bf16.msra.mxu0 %v752_v27 }
  0xdd   :  { %690 = vmatprep.subr.bf16.mxu0 %v890_v1 }
  0xe0   :  { %691 = vmatpush3.bf16.msra.mxu0 %v753_v28 }
  0xe1   :  { %692 = vmatprep.subr.bf16.mxu0 %v890_v1 }
  0xe4   :  { %693 = vmatpush3.bf16.msra.mxu0 %v754_v29 }
  0xe5   :  { %694 = vmatprep.subr.bf16.mxu0 %v890_v1 }
  0xe8   :  { %695 = vmatpush3.bf16.msra.mxu0 %v755_v38 }
  0xe9   :  { %696 = vmatprep.subr.bf16.mxu0 %v890_v1 }
  0xec   :  { %697 = vmatpush3.bf16.msra.mxu0 %v756_v39 }
 0x1a2   :  { %v207_v31 = vpop.f32.mrb[0].mxu0 }
 0x1a3   :  { %v208_v32 = vadd.f32 %v570_v30, %v207_v31  ;;  %v660_v33 = vpop.f32.mrb[1].mxu0 }
 0x1a4   :  { %v210_v34 = vpop.f32.mrb[2].mxu0 }
 0x1a5   :  { %v213_v35 = vmax.f32 %v208_v32, 0.0  ;;  %v661_v36 = vpop.f32.mrb[3].mxu0 }
 0x1a7   :  { %v214_v37 = vpack.c.bf16 %v213_v35, %v213_v35 }
 0x1a9   :  { %679 = vmatmul.mubr.bf16.vlgmr.msra.gmra.mrb[0].mxu1 %v214_v37 }
 0x1aa   :  { %718 = vmatprep.mubr.msk.bf16.mxu1 %vm891_vm0, %v890_v1  ;;  %703 = vmatpush3.bf16.msra.mxu1 %v757_v40 }
 0x1ab   :  { %704 = vmatprep.subr.bf16.mxu1 %v890_v1 }
 0x1ae   :  { %705 = vmatpush3.bf16.msra.mxu1 %v758_v41 }
 0x1af   :  { %706 = vmatprep.subr.bf16.mxu1 %v890_v1 }
 0x1b2   :  { %707 = vmatpush3.bf16.msra.mxu1 %v759_v42 }
 0x1b3   :  { %708 = vmatprep.subr.bf16.mxu1 %v890_v1 }
 0x1b6   :  { %709 = vmatpush3.bf16.msra.mxu1 %v760_v43 }
 0x1b7   :  { %710 = vmatprep.subr.bf16.mxu1 %v890_v1 }
 0x1ba   :  { %711 = vmatpush3.bf16.msra.mxu1 %v761_v44 }
 0x1bb   :  { %712 = vmatprep.subr.bf16.mxu1 %v890_v1 }
 0x1be   :  { %713 = vmatpush3.bf16.msra.mxu1 %v762_v45 }
 0x1bf   :  { %714 = vmatprep.subr.bf16.mxu1 %v890_v1 }
 0x1c2   :  { %715 = vmatpush3.bf16.msra.mxu1 %v763_v54 }
 0x1c3   :  { %716 = vmatprep.subr.bf16.mxu1 %v890_v1 }
 0x1c6   :  { %717 = vmatpush3.bf16.msra.mxu1 %v764_v55 }
 0x27c   :  { %v320_v47 = vpop.f32.mrb[0].mxu1 }
 0x27d   :  { %v321_v48 = vadd.f32 %v579_v46, %v320_v47  ;;  %v680_v49 = vpop.f32.mrb[1].mxu1 }
 0x27e   :  { %v323_v50 = vpop.f32.mrb[2].mxu1 }
 0x27f   :  { %v326_v51 = vmax.f32 %v321_v48, 0.0  ;;  %v681_v52 = vpop.f32.mrb[3].mxu1 }
 0x281   :  { %v327_v53 = vpack.c.bf16 %v326_v51, %v326_v51 }
 0x283   :  { %699 = vmatmul.mubr.bf16.vlgmr.msra.gmra.mrb[4].mxu0 %v327_v53 }
 0x356   :  { %v433_v57 = vpop.f32.mrb[4].mxu0 }
 0x357   :  { %v434_v58 = vadd.f32 %v588_v56, %v433_v57  ;;  %v700_v59 = vpop.f32.mrb[5].mxu0 }
 0x358   :  { %v436_v60 = vpop.f32.mrb[6].mxu0 }
 0x359   :  { %v439_v61 = vmax.f32 %v434_v58, 0.0  ;;  %v701_v62 = vpop.f32.mrb[7].mxu0 }
 0x35b   :  { %v440_v63 = vpack.c.bf16 %v439_v61, %v439_v61 }
 0x35d   :  { %719 = vmatmul.mubr.bf16.vlgmr.msra.gmra.mrb[4].mxu1 %v440_v63 }
 0x430   :  { %v546_v1 = vpop.f32.mrb[4].mxu1 }
 0x431   :  { %v547_v2 = vadd.f32 %v597_v0, %v546_v1  ;;  %v720_v3 = vpop.f32.mrb[5].mxu1 }
 0x432   :  { %v549_v4 = vpop.f32.mrb[6].mxu1 }
 0x433   :  { %552 = vst [vmem:[#allocation10] sm:$0xff] %v547_v2  ;;  %v721_v5 = vpop.f32.mrb[7].mxu1 }
 0x434   :  { %864 = shalt.err (!%p861_p8)
}
 0x435   :  { %s865_s9 = scalar_lea.hbm %s1102_s10, 128 }
 0x436   :  { %p866_p9 = scmp.ne.s32.totalorder %s1102_s10, %s865_s9  ;;  %p869_p10 = scmp.lt.u32.totalorder %s865_s9, %s1102_s10 }
 0x438   :  { %p871_p11 = pnand %p869_p10, %p866_p9 }
 0x43a   :  { %874 = shalt.err (!%p871_p11)
}
 0x43b   :  { %562 = dma.vmem_to_hbm [thread:$0]  %s560_s30, 128, %s1102_s10, [#allocation4]  }
 0x43c   :  { %881 = dma.done.wait [#allocation4], 128  }
 0x43d   :  { %882 = vsyncadd [#allocation4], 4294967168 }
 0x43e   :  { %566 = vsyncpa [#allocation3], 1 }
 0x43f   :  { %567 = vsyncpa [#allocation6], 1 }
 0x440   :  { %568 = vsyncpa [#allocation9], 1 }
 0x441   :  { %569 = vsyncpa [#allocation4], 1 }

</bundles_post_ra>
